<compile_context>
chip_gen: v5e
topology: v5e:2x2
jax: 0.10.0
libtpu: 0.0.40
codegen_flags: <defaults>
</compile_context>

<pallas_src>
import math

import jax
import jax.numpy as jnp
from jax.experimental import pallas as pl
from jax.experimental.pallas import tpu as pltpu


_ROLL_CUMSUM_MAX_C = 64                  # roll-based cumsum (no MXU) for C <= this
_TILE_BUDGET_BYTES = 12 * 1024 * 1024    # live f32 working set per tile (v7x-safe)
_VMEM_LIMIT_BYTES = 32 * 1024 * 1024     # explicit scoped-VMEM request


def _lcm(a, b):
    return a * b // math.gcd(a, b)


def _vmem_estimate(cols, *, C, P, norm):
    """Rough bytes of live f32 per tile (x dbuf, ybc, d, cdf, select mats, y)."""
    nb = max(1, cols // P)
    k_sel = 0 if P == 1 else (2 if norm else 1)
    return 4 * (6 * C * cols + k_sel * nb * cols + 4 * C * nb + 8 * cols)


def _choose_tiling(N, B, P, C, norm, max_tile_cols):
    """Whole batches per tile; 128-lane aligned whenever more than one tile."""
    single_ok = _vmem_estimate(N, C=C, P=P, norm=norm) <= _TILE_BUDGET_BYTES
    if max_tile_cols is not None:
        single_ok = single_ok and N <= max_tile_cols
    if single_ok:
        return N, B, 1

    unit = _lcm(P, 128)                       # whole batches AND lane aligned
    j_cap = max(1, -(-N // unit))
    if max_tile_cols is not None:
        j_cap = max(1, min(j_cap, max_tile_cols // unit))
    j = 1
    while (j < j_cap and
           _vmem_estimate((j + 1) * unit, C=C, P=P, norm=norm)
           <= _TILE_BUDGET_BYTES):
        j += 1
    tile_cols = j * unit
    bpt = tile_cols // P
    num_tiles = -(-B // bpt)
    return tile_cols, bpt, num_tiles


def _make_kernel(*, C, P, tile_cols, batches_per_tile, num_batches,
                 dist_r, eps, beta, k, norm, use_matmul):
    inv_c = 1.0 / float(C)
    T = tile_cols
    nb = batches_per_tile

    def kernel(*refs):
        o_ref = refs[-1]
        x_ref, y_ref = refs[0], refs[1]
        tri_ref = refs[2] if use_matmul else None

        x = x_ref[...].astype(jnp.float32)           # (C, T)  bins x samples
        y = y_ref[0].astype(jnp.float32)             # (C, nb) bins x batches

        # Broadcast y to the patch columns: exact 0/1-select matmul on the MXU
        # (column t of the tile belongs to local batch t // P).
        if P == 1:
            ybc = y                                   # nb == T, no repeat needed
        else:
            b_ids = jax.lax.broadcasted_iota(jnp.int32, (nb, T), 0)
            c_ids = jax.lax.broadcasted_iota(jnp.int32, (nb, T), 1)
            sel = jnp.where((c_ids >= b_ids * P) & (c_ids < b_ids * P + P),
                            1.0, 0.0).astype(jnp.float32)
            ybc = jnp.dot(y, sel, preferred_element_type=jnp.float32)   # (C, T)

        # cumsum(y) - cumsum(x) == cumsum(y - x)
        d = ybc - x

        if use_matmul:
            # single 2-D MXU matmul: lower-triangular ones @ diff == cumsum over C
            cdf = jnp.dot(tri_ref[...], d.astype(tri_ref.dtype),
                          preferred_element_type=jnp.float32)
        else:
            # small C: Hillis-Steele scan along the sublane axis -- log2(C)
            # roll + masked-add passes on otherwise idle XLU/VPU slots.
            cdf = d
            row = jax.lax.broadcasted_iota(jnp.int32, (C, T), 0)
            shift = 1
            while shift < C:
                rolled = pltpu.roll(cdf, shift=shift, axis=0)
                cdf = cdf + jnp.where(row >= shift, rolled, 0.0)
                shift *= 2

        if dist_r == 2:
            loss = jnp.sqrt(jnp.sum(cdf * cdf, axis=0, keepdims=True) * inv_c)  # (1,T)
        else:
            loss = jnp.sum(jnp.abs(cdf), axis=0, keepdims=True) * inv_c          # (1,T)

        emdc = jnp.maximum(jnp.float32(eps), 1.0 - k * loss)
        # emdc ** beta with emdc >= eps > 0  ->  exp(beta * log(emdc)) (EUP ops)
        weight = 1.0 - jnp.exp(beta * jnp.log(emdc))

        if norm:
            lw = loss * weight
            if P == 1:
                # one patch per batch: per-batch den is the weight itself
                first_col = pl.program_id(0) * T
                col = first_col + jax.lax.broadcasted_iota(jnp.int32, (1, T), 1)
                valid = col < num_batches
                partial = jnp.sum(jnp.where(valid, lw / weight, 0.0))
            else:
                # per-batch scalars num_b = sum_p(loss*w), den_b = sum_p(w) via a
                # small in-kernel segment matmul; only per-batch divisions remain.
                t_ids = jax.lax.broadcasted_iota(jnp.int32, (T, nb), 0)
                g_ids = jax.lax.broadcasted_iota(jnp.int32, (T, nb), 1)
                seg = jnp.where((t_ids >= g_ids * P) & (t_ids < g_ids * P + P),
                                1.0, 0.0).astype(jnp.float32)
                num = jnp.dot(lw, seg, preferred_element_type=jnp.float32)       # (1,nb)
                den = jnp.dot(weight, seg, preferred_element_type=jnp.float32)   # (1,nb)
                first_b = pl.program_id(0) * nb
                bidx = first_b + jax.lax.broadcasted_iota(jnp.int32, (1, nb), 1)
                valid = bidx < num_batches          # drop zero-padded batches
                partial = jnp.sum(jnp.where(valid, num / den, 0.0))
        else:
            partial = jnp.sum(loss * weight)        # zero-padded columns add 0

        # Per-tile partial sum written to this tile's own lane-aligned output
        # block (keeps the grid axis "parallel"; tiny cross-tile reduce in XLA).
        ri = jax.lax.broadcasted_iota(jnp.int32, (8, 128), 0)
        ci = jax.lax.broadcasted_iota(jnp.int32, (8, 128), 1)
        o_ref[...] = jnp.where((ri == 0) & (ci == 0), partial, 0.0)

    return kernel


def mp_emd_loss(x, y_true, *, dist_r=2, eps=1e-6, beta=0.7, k=1.2, norm=False,
                max_tile_cols=None, matmul_in_bf16=False):
    """Pallas implementation of MPEMDLoss.forward.

    x:      (B, P, C) per-patch predicted distributions
    y_true: (B, C)    per-image target distribution
    returns scalar f32 loss
    """
    B, P, C = x.shape
    assert y_true.shape == (B, C)
    N = B * P

    tile_cols, bpt, num_tiles = _choose_tiling(N, B, P, C, norm, max_tile_cols)
    n_pad = num_tiles * tile_cols
    b_pad = num_tiles * bpt

    # Lane-dense transposed layout: bins on sublanes, samples on lanes.
    x_t = jnp.asarray(x).reshape(N, C).T                   # (C, N)
    if n_pad != N:                                          # pad whole zero batches
        x_t = jnp.pad(x_t, ((0, 0), (0, n_pad - N)))

    # y stays un-repeated: (num_tiles, C, batches_per_tile), broadcast in-kernel.
    y_arr = jnp.asarray(y_true)
    if b_pad != B:
        y_arr = jnp.pad(y_arr, ((0, b_pad - B), (0, 0)))
    y_b = y_arr.reshape(num_tiles, bpt, C).transpose(0, 2, 1)   # (nt, C, bpt)

    use_matmul = C > _ROLL_CUMSUM_MAX_C

    operands = [x_t, y_b]
    in_specs = [
        pl.BlockSpec((C, tile_cols), lambda i: (0, i)),
        pl.BlockSpec((1, C, bpt), lambda i: (i, 0, 0)),
    ]
    if use_matmul:
        tri_dtype = jnp.bfloat16 if matmul_in_bf16 else jnp.float32
        tri = jnp.tril(jnp.ones((C, C), dtype=tri_dtype))   # tri @ d == cumsum(d)
        operands.append(tri)
        in_specs.append(pl.BlockSpec((C, C), lambda i: (0, 0)))

    kernel = _make_kernel(
        C=C, P=P, tile_cols=tile_cols, batches_per_tile=bpt, num_batches=B,
        dist_r=dist_r, eps=eps, beta=beta, k=k, norm=norm, use_matmul=use_matmul)

    # Advisory cost estimate.
    per_tile_flops = 8 * C * tile_cols + 16 * tile_cols
    if P > 1:
        per_tile_flops += 2 * C * bpt * tile_cols           # y broadcast matmul
    if use_matmul:
        per_tile_flops += 2 * C * C * tile_cols
    else:
        per_tile_flops += 3 * int(math.ceil(math.log2(max(C, 2)))) * C * tile_cols
    if norm and P > 1:
        per_tile_flops += 4 * bpt * tile_cols
    bytes_accessed = (n_pad * C * 4 + num_tiles * C * bpt * 4
                      + (C * C * 4 if use_matmul else 0) + num_tiles * 8 * 128 * 4)
    cost = pl.CostEstimate(flops=int(per_tile_flops * num_tiles),
                           transcendentals=int(3 * n_pad),
                           bytes_accessed=int(bytes_accessed))

    vmem_limit = int(min(64 * 1024 * 1024,
                         max(_VMEM_LIMIT_BYTES,
                             2 * _vmem_estimate(tile_cols, C=C, P=P, norm=norm))))

    partials = pl.pallas_call(
        kernel,
        out_shape=jax.ShapeDtypeStruct((num_tiles * 8, 128), jnp.float32),
        grid=(num_tiles,),
        in_specs=in_specs,
        out_specs=pl.BlockSpec((8, 128), lambda i: (i, 0)),
        compiler_params=pltpu.CompilerParams(
            dimension_semantics=("parallel",),
            vmem_limit_bytes=vmem_limit),
        cost_estimate=cost,
    )(*operands)

    return jnp.sum(partials) / N


def mp_emd_loss_ref(x, y_true, *, dist_r=2, eps=1e-6, beta=0.7, k=1.2, norm=False):
    """Pure-JAX reference mirroring the PyTorch forward exactly."""
    B, P, C = x.shape
    x_flat = x.reshape(-1, C)
    y_flat = jnp.repeat(y_true, P, axis=0)          # == y.repeat(1, P).view(-1, C)
    cdf_x = jnp.cumsum(x_flat, axis=-1)
    cdf_y = jnp.cumsum(y_flat, axis=-1)
    if dist_r == 2:
        loss = jnp.sqrt(jnp.mean((cdf_y - cdf_x) ** 2, axis=-1))
    else:
        loss = jnp.mean(jnp.abs(cdf_y - cdf_x), axis=-1)
    loss = loss.reshape(B, P)
    emdc = jnp.maximum(eps, 1.0 - k * loss)
    weight = 1.0 - emdc ** beta
    if norm:
        weight = weight / jnp.sum(weight, axis=1, keepdims=True)
    return jnp.mean(loss * weight)


if __name__ == "__main__":
    key = jax.random.PRNGKey(0)

    def make_inputs(subkey, B, P, C):
        kx, ky = jax.random.split(subkey)
        x = jax.nn.softmax(jax.random.normal(kx, (B, P, C), jnp.float32), axis=-1)
        y = jax.nn.softmax(jax.random.normal(ky, (B, C), jnp.float32), axis=-1)
        return x, y

    cases = [
        ((2, 8, 16), dict()),                               # defaults: roll-cumsum path
        ((2, 8, 16), dict(norm=True, dist_r=1)),            # norm + L1 branch
        ((2, 8, 128), dict()),                              # MXU tril-matmul path
        ((20, 8, 16), dict(norm=True, max_tile_cols=128)),  # multi-tile grid + padding
        ((8, 1, 16), dict()),                               # single-patch shortcut
        ((8, 1, 16), dict(norm=True)),                      # single-patch + norm
    ]
    keys = jax.random.split(key, len(cases))
    for sk, ((B, P, C), kw) in zip(keys, cases):
        x, y = make_inputs(sk, B, P, C)
        out = jax.block_until_ready(mp_emd_loss(x, y, **kw))
        ref_kw = {name: v for name, v in kw.items() if name in ("dist_r", "norm")}
        ref = jax.block_until_ready(mp_emd_loss_ref(x, y, **ref_kw))
        assert jnp.allclose(out, ref, rtol=5e-5, atol=1e-6), ((B, P, C), kw, out, ref)

    print("KERNEL_OK")
</pallas_src>

<mosaic_0001>
module attributes {stable_mosaic.version = 11 : i64} {
  func.func @kernel(%arg0: i32, %arg1: memref<16x16xf32, #tpu.memory_space<vmem>>, %arg2: memref<1x16x2xf32, #tpu.memory_space<vmem>>, %arg3: memref<8x128xf32, #tpu.memory_space<vmem>>) attributes {dimension_semantics = [#tpu.dimension_semantics<parallel>], iteration_bounds = array<i64: 1>, scalar_prefetch = 0 : i64, scratch_operands = 0 : i64, tpu.core_type = #tpu.core_type<tc>, window_params = [{transform_indices = @transform_0, window_bounds = array<i64: 16, 16>}, {transform_indices = @transform_1, window_bounds = array<i64: 1, 16, 2>}, {transform_indices = @transform_2, window_bounds = array<i64: 8, 128>}]} {
    %c0 = arith.constant 0 : index
    %c0_0 = arith.constant 0 : index
    %0 = vector.load %arg1[%c0, %c0_0] : memref<16x16xf32, #tpu.memory_space<vmem>>, vector<16x16xf32>
    %c0_1 = arith.constant 0 : index
    %c0_2 = arith.constant 0 : index
    %c0_3 = arith.constant 0 : index
    %1 = vector.load %arg2[%c0_1, %c0_2, %c0_3] : memref<1x16x2xf32, #tpu.memory_space<vmem>>, vector<1x16x2xf32>
    %2 = vector.shape_cast %1 : vector<1x16x2xf32> to vector<16x2xf32>
    %3 = tpu.iota {dimensions = array<i32: 0>} : vector<2x16xi32>
    %4 = tpu.iota {dimensions = array<i32: 1>} : vector<2x16xi32>
    %c8_i32 = arith.constant 8 : i32
    %5 = vector.broadcast %c8_i32 : i32 to vector<2x16xi32>
    %6 = arith.muli %3, %5 : vector<2x16xi32>
    %7 = arith.cmpi sge, %4, %6 : vector<2x16xi32>
    %c8_i32_4 = arith.constant 8 : i32
    %8 = vector.broadcast %c8_i32_4 : i32 to vector<2x16xi32>
    %9 = arith.muli %3, %8 : vector<2x16xi32>
    %c8_i32_5 = arith.constant 8 : i32
    %10 = vector.broadcast %c8_i32_5 : i32 to vector<2x16xi32>
    %11 = arith.addi %9, %10 : vector<2x16xi32>
    %12 = arith.cmpi slt, %4, %11 : vector<2x16xi32>
    %13 = arith.andi %7, %12 : vector<2x16xi1>
    %cst = arith.constant 1.000000e+00 : f32
    %cst_6 = arith.constant 0.000000e+00 : f32
    %14 = vector.broadcast %cst : f32 to vector<2x16xf32>
    %15 = vector.broadcast %cst_6 : f32 to vector<2x16xf32>
    %16 = arith.select %13, %14, %15 : vector<2x16xi1>, vector<2x16xf32>
    %cst_7 = arith.constant dense<0.000000e+00> : vector<16x16xf32>
    %17 = tpu.matmul %2, %16, %cst_7 {dimension_numbers = #tpu.dot_dimension_numbers<[1], [0], [0], [1], [0, 0, 1, 1], [], []>} : vector<16x2xf32>, vector<2x16xf32>, vector<16x16xf32> -> vector<16x16xf32>
    %18 = arith.subf %17, %0 : vector<16x16xf32>
    %19 = tpu.iota {dimensions = array<i32: 0>} : vector<16x16xi32>
    %c1_i32 = arith.constant 1 : i32
    %20 = tpu.dynamic_rotate %18 by %c1_i32 dim 0 : vector<16x16xf32>, i32 -> vector<16x16xf32>
    %c1_i32_8 = arith.constant 1 : i32
    %21 = vector.broadcast %c1_i32_8 : i32 to vector<16x16xi32>
    %22 = arith.cmpi sge, %19, %21 : vector<16x16xi32>
    %cst_9 = arith.constant 0.000000e+00 : f32
    %23 = vector.broadcast %cst_9 : f32 to vector<16x16xf32>
    %24 = arith.select %22, %20, %23 : vector<16x16xi1>, vector<16x16xf32>
    %25 = arith.addf %18, %24 : vector<16x16xf32>
    %c2_i32 = arith.constant 2 : i32
    %26 = tpu.dynamic_rotate %25 by %c2_i32 dim 0 : vector<16x16xf32>, i32 -> vector<16x16xf32>
    %c2_i32_10 = arith.constant 2 : i32
    %27 = vector.broadcast %c2_i32_10 : i32 to vector<16x16xi32>
    %28 = arith.cmpi sge, %19, %27 : vector<16x16xi32>
    %cst_11 = arith.constant 0.000000e+00 : f32
    %29 = vector.broadcast %cst_11 : f32 to vector<16x16xf32>
    %30 = arith.select %28, %26, %29 : vector<16x16xi1>, vector<16x16xf32>
    %31 = arith.addf %25, %30 : vector<16x16xf32>
    %c4_i32 = arith.constant 4 : i32
    %32 = tpu.dynamic_rotate %31 by %c4_i32 dim 0 : vector<16x16xf32>, i32 -> vector<16x16xf32>
    %c4_i32_12 = arith.constant 4 : i32
    %33 = vector.broadcast %c4_i32_12 : i32 to vector<16x16xi32>
    %34 = arith.cmpi sge, %19, %33 : vector<16x16xi32>
    %cst_13 = arith.constant 0.000000e+00 : f32
    %35 = vector.broadcast %cst_13 : f32 to vector<16x16xf32>
    %36 = arith.select %34, %32, %35 : vector<16x16xi1>, vector<16x16xf32>
    %37 = arith.addf %31, %36 : vector<16x16xf32>
    %c8_i32_14 = arith.constant 8 : i32
    %38 = tpu.dynamic_rotate %37 by %c8_i32_14 dim 0 : vector<16x16xf32>, i32 -> vector<16x16xf32>
    %c8_i32_15 = arith.constant 8 : i32
    %39 = vector.broadcast %c8_i32_15 : i32 to vector<16x16xi32>
    %40 = arith.cmpi sge, %19, %39 : vector<16x16xi32>
    %cst_16 = arith.constant 0.000000e+00 : f32
    %41 = vector.broadcast %cst_16 : f32 to vector<16x16xf32>
    %42 = arith.select %40, %38, %41 : vector<16x16xi1>, vector<16x16xf32>
    %43 = arith.addf %37, %42 : vector<16x16xf32>
    %44 = arith.mulf %43, %43 : vector<16x16xf32>
    %cst_17 = arith.constant dense<0.000000e+00> : vector<16xf32>
    %45 = vector.multi_reduction <add>, %44, %cst_17 [0] : vector<16x16xf32> to vector<16xf32>
    %46 = vector.shape_cast %45 : vector<16xf32> to vector<1x16xf32>
    %cst_18 = arith.constant 6.250000e-02 : f32
    %47 = vector.broadcast %cst_18 : f32 to vector<1x16xf32>
    %48 = arith.mulf %46, %47 : vector<1x16xf32>
    %49 = math.sqrt %48 : vector<1x16xf32>
    %cst_19 = arith.constant 1.200000e+00 : f32
    %50 = vector.broadcast %cst_19 : f32 to vector<1x16xf32>
    %51 = arith.mulf %50, %49 : vector<1x16xf32>
    %cst_20 = arith.constant 1.000000e+00 : f32
    %52 = vector.broadcast %cst_20 : f32 to vector<1x16xf32>
    %53 = arith.subf %52, %51 : vector<1x16xf32>
    %cst_21 = arith.constant 9.99999997E-7 : f32
    %54 = vector.broadcast %cst_21 : f32 to vector<1x16xf32>
    %55 = arith.maximumf %54, %53 : vector<1x16xf32>
    %56 = math.log %55 : vector<1x16xf32>
    %cst_22 = arith.constant 0.699999988 : f32
    %57 = vector.broadcast %cst_22 : f32 to vector<1x16xf32>
    %58 = arith.mulf %57, %56 : vector<1x16xf32>
    %59 = math.exp %58 : vector<1x16xf32>
    %cst_23 = arith.constant 1.000000e+00 : f32
    %60 = vector.broadcast %cst_23 : f32 to vector<1x16xf32>
    %61 = arith.subf %60, %59 : vector<1x16xf32>
    %62 = arith.mulf %49, %61 : vector<1x16xf32>
    %63 = vector.shape_cast %62 : vector<1x16xf32> to vector<1x1x16xf32>
    %cst_24 = arith.constant dense<0.000000e+00> : vector<1xf32>
    %64 = vector.multi_reduction <add>, %63, %cst_24 [1, 2] : vector<1x1x16xf32> to vector<1xf32>
    %65 = vector.shape_cast %64 : vector<1xf32> to vector<1x1x1xf32>
    %66 = vector.extract %65[0, 0, 0] : f32 from vector<1x1x1xf32>
    %67 = tpu.iota {dimensions = array<i32: 0>} : vector<8x128xi32>
    %68 = tpu.iota {dimensions = array<i32: 1>} : vector<8x128xi32>
    %c0_i32 = arith.constant 0 : i32
    %69 = vector.broadcast %c0_i32 : i32 to vector<8x128xi32>
    %70 = arith.cmpi eq, %67, %69 : vector<8x128xi32>
    %c0_i32_25 = arith.constant 0 : i32
    %71 = vector.broadcast %c0_i32_25 : i32 to vector<8x128xi32>
    %72 = arith.cmpi eq, %68, %71 : vector<8x128xi32>
    %73 = arith.andi %70, %72 : vector<8x128xi1>
    %cst_26 = arith.constant 0.000000e+00 : f32
    %74 = vector.broadcast %66 : f32 to vector<8x128xf32>
    %75 = vector.broadcast %cst_26 : f32 to vector<8x128xf32>
    %76 = arith.select %73, %74, %75 : vector<8x128xi1>, vector<8x128xf32>
    %c0_27 = arith.constant 0 : index
    %c0_28 = arith.constant 0 : index
    %77 = vector.load %arg3[%c0_27, %c0_28] : memref<8x128xf32, #tpu.memory_space<vmem>>, vector<8x128xf32>
    tpu.vector_store %arg3[%c0_27, %c0_28], %76 {strides = array<i32>} : memref<8x128xf32, #tpu.memory_space<vmem>>, vector<8x128xf32>,
    return
  }
  func.func @transform_0(%arg0: i32) -> (i32, i32) {
    %c0_i32 = arith.constant 0 : i32
    %c0_i32_0 = arith.constant 0 : i32
    return %c0_i32, %arg0 : i32, i32
  }
  func.func @transform_1(%arg0: i32) -> (i32, i32, i32) {
    %c0_i32 = arith.constant 0 : i32
    %c0_i32_0 = arith.constant 0 : i32
    %c0_i32_1 = arith.constant 0 : i32
    return %arg0, %c0_i32, %c0_i32_0 : i32, i32, i32
  }
  func.func @transform_2(%arg0: i32) -> (i32, i32) {
    %c0_i32 = arith.constant 0 : i32
    %c0_i32_0 = arith.constant 0 : i32
    return %arg0, %c0_i32 : i32, i32
  }
}

</mosaic_0001>

<bundles_post_ra>
// kernel: tpu_custom_call.1
= control target key start
LH: loop header
LB: loop body
LE: loop exit
PB: predicated region body
PF: predicated region fallthrough
CT: control target
= control target key end

     0   :  { %v16_v0 = vlaneseq  ;;  %s257_s0 = inlined_call_operand.vmem [shape: f32[16,16], index: 0, kind: input, shape index: {}]   ;;  %s258_s1 = inlined_call_operand.vmem [shape: f32[1,16,2], index: 1, kind: input, shape index: {}]   ;;  %s259_s2 = inlined_call_operand.hbm [shape: f32[8,128], index: 2, kind: output, shape index: {}]  }
   0x1   :  { %7 = vsyncpa [#allocation3], 0  ;;  %vm33_vm2 = vcmask 1041408   ;;  %v14_v5 = vld [vmem:[%s258_s1] sm:$0xff]  ;;  %vm26_vm4 = vcmask 15360   ;;  %v15_v6 = vld [vmem:[%s258_s1 + $0x8] sm:$0xff] }
   0x2   :  { %v227_v1 = vshrl.u32 %v16_v0, 7  ;;  %v229_v2 = vand.u32 127, %v16_v0  ;;  %v210_v7 = vmov 0.0   ;;  %v12_v9 = vld [vmem:[%s257_s0] sm:$0xff]  ;;  %v13_v10 = vld [vmem:[%s257_s0 + $0x8] sm:$0xff]  ;;  %vm104_vm11 = vcmask 130048  }
   0x3   :  { %vm137_vm14 = vcmask 122880   ;;  %s211_s0 = smov [#allocation2]   ;;  %s161_s19 = sshll.u32 %s259_s2, 4  ;;  %s162_s19 = int_to_ptr.hbm [resolvable:$true] %s161_s19 }
   0x4   :  { %v20_v3 = vmul.u32 8, %v227_v1  ;;  %vm65_vm5 = vcmp.lt.s32.totalorder %v227_v1, 1  ;;  %vm68_vm6 = vcmp.ge.s32.totalorder %v227_v1, 1  ;;  %vm76_vm7 = vcmp.lt.s32.totalorder %v227_v1, 2  ;;  %s159_s1 = sshll.u32 %s211_s0, 4  ;;  %s160_s1 = int_to_ptr.vmem [resolvable:$true] %s159_s1 }
   0x5   :  { %vm79_vm8 = vcmp.ge.s32.totalorder %v227_v1, 2  ;;  %vm87_vm9 = vcmp.lt.s32.totalorder %v227_v1, 4  ;;  %vm90_vm10 = vcmp.ge.s32.totalorder %v227_v1, 4  ;;  %vm148_vm15 = vcmp.eq.s32.totalorder %v227_v1, 0 }
   0x6   :  { %vm21_vm0 = vcmp.ge.s32.totalorder %v229_v2, %v20_v3  ;;  %v22_v4 = vadd.s32 8, %v20_v3 }
   0x8   :  { %vm23_vm1 = vcmp.lt.s32.totalorder %v229_v2, %v22_v4 }
   0x9   :  { %vm24_vm3 = vmand %vm21_vm0, %vm23_vm1  ;;  %vm149_vm0 = vcmp.eq.s32.totalorder %v229_v2, 0 }
   0xa   :  { %v25_v8 = vsel %vm24_vm3, 1.0, %v210_v7  ;;  %vm150_vm1 = vmand %vm148_vm15, %vm149_vm0 }
   0xb   :  { %170 = vmatpush.msk.msra.mxu0 %vm33_vm2, %v25_v8  ;;  %173 = vmatpush.msk.msra.mxu1 %vm33_vm2, %v25_v8 }
   0xc   :  { %171 = vmatmul.msk.f32.vlgmr.msra.gmra.mxu0 %vm26_vm4, %v14_v5  ;;  %172 = vmatmul.msk.f32.vlgmr.msra.gmra.mxu1 %vm26_vm4, %v15_v6 }
  0x89   :  { %v54_v11 = vpop.f32.mrf.mxu0  ;;  %v57_v12 = vpop.f32.mrf.mxu1 }
  0x8a   :  { %v60_v13 = vsub.f32 %v54_v11, %v12_v9  ;;  %v61_v14 = vsub.f32 %v57_v12, %v13_v10 }
  0x8c   :  { %v63_v15 = vrot.slane %v60_v13, 7  ;;  %v64_v16 = vrot.slane %v61_v14, 7 }
  0x8e   :  { %v66_v17 = vsel %vm65_vm5, %v63_v15, %v64_v16  ;;  %v67_v18 = vsel %vm65_vm5, %v64_v16, %v63_v15 }
  0x8f   :  { %v70_v19 = vsel %vm68_vm6, %v67_v18, 0.0  ;;  %v73_v20 = vadd.f32 %v66_v17, %v61_v14 }
  0x90   :  { %v72_v21 = vadd.f32 %v70_v19, %v60_v13 }
  0x91   :  { %v75_v22 = vrot.slane %v73_v20, 6 }
  0x92   :  { %v74_v23 = vrot.slane %v72_v21, 6 }
  0x94   :  { %v77_v24 = vsel %vm76_vm7, %v74_v23, %v75_v22  ;;  %v78_v25 = vsel %vm76_vm7, %v75_v22, %v74_v23 }
  0x95   :  { %v81_v26 = vsel %vm79_vm8, %v78_v25, 0.0  ;;  %v84_v27 = vadd.f32 %v77_v24, %v73_v20 }
  0x96   :  { %v83_v28 = vadd.f32 %v81_v26, %v72_v21 }
  0x97   :  { %v86_v29 = vrot.slane %v84_v27, 4 }
  0x98   :  { %v85_v30 = vrot.slane %v83_v28, 4 }
  0x9a   :  { %v88_v31 = vsel %vm87_vm9, %v85_v30, %v86_v29  ;;  %v89_v32 = vsel %vm87_vm9, %v86_v29, %v85_v30 }
  0x9b   :  { %v92_v33 = vsel %vm90_vm10, %v89_v32, 0.0  ;;  %v95_v34 = vadd.f32 %v88_v31, %v84_v27 }
  0x9c   :  { %v94_v35 = vadd.f32 %v92_v33, %v83_v28 }
  0x9e   :  { %v101_v36 = vadd.f32 %v95_v34, %v94_v35  ;;  %v102_v37 = vmul.f32 %v94_v35, %v94_v35 }
  0xa0   :  { %v103_v38 = vmul.f32 %v101_v36, %v101_v36  ;;  %v105_v39 = vsel %vm104_vm11, %v102_v37, 0.0 }
  0xa2   :  { %v106_v40 = vsel %vm104_vm11, %v103_v38, 0.0 }
  0xa3   :  { %v107_v41 = vadd.f32 %v106_v40, %v105_v39 }
  0xa5   :  { %v108_v42 = vrot.slane %v107_v41, 4 }
  0xa7   :  { %v109_v43 = vadd.f32 %v108_v42, %v107_v41 }
  0xa9   :  { %v110_v44 = vrot.slane %v109_v43, 2 }
  0xab   :  { %v111_v45 = vadd.f32 %v110_v44, %v109_v43 }
  0xad   :  { %v112_v46 = vrot.slane %v111_v45, 1 }
  0xaf   :  { %v113_v47 = vadd.f32 %v112_v46, %v111_v45 }
  0xb1   :  { %v114_v48 = vmul.f32 0.0625, %v113_v47 }
  0xb3   :  { %178 = vrsqrt.f32 %v114_v48  ;;  %vm122_vm12 = vcmp.eq.f32.partialorder %v114_v48, inf  ;;  %v125_v56 = vand.u32 2147483648, %v114_v48  ;;  %vm124_vm13 = vcmp.eq.f32.partialorder %v114_v48, 0.0 }
  0xb9   :  { %v179_v49 = vpop.eup %178 }
  0xba   :  { %v116_v50 = vmul.f32 %v179_v49, %v114_v48 }
  0xbc   :  { %v117_v51 = vmul.f32 %v179_v49, %v116_v50 }
  0xbe   :  { %v118_v52 = vmul.f32 0.5, %v117_v51 }
  0xc0   :  { %v119_v53 = vsub.f32 1.5, %v118_v52 }
  0xc2   :  { %v120_v54 = vmul.f32 %v179_v49, %v119_v53 }
  0xc4   :  { %v121_v55 = vmul.f32 %v120_v54, %v114_v48 }
  0xc6   :  { %v123_v57 = vsel %vm122_vm12, %v114_v48, %v121_v55 }
  0xc7   :  { %v126_v58 = vsel %vm124_vm13, %v125_v56, %v123_v57 }
  0xc8   :  { %v127_v59 = vmul.f32 1.2, %v126_v58 }
  0xca   :  { %v128_v60 = vsub.f32 1.0, %v127_v59 }
  0xcc   :  { %v129_v61 = vmax.f32 %v128_v60, 1e-06 }
  0xce   :  { %180 = vlog2.f32 %v129_v61 }
  0xd4   :  { %v181_v62 = vpop.eup %180 }
  0xd5   :  { %v131_v63 = vmul.f32 0.6931472, %v181_v62 }
  0xd7   :  { %v132_v0 = vmul.f32 0.7, %v131_v63 }
  0xd9   :  { %v133_v3 = vmul.f32 1.442695, %v132_v0 }
  0xdb   :  { %182 = vpow2.f32 %v133_v3 }
  0xe1   :  { %v183_v4 = vpop.eup %182 }
  0xe2   :  { %v135_v5 = vsub.f32 1.0, %v183_v4 }
  0xe4   :  { %v136_v6 = vmul.f32 %v135_v5, %v126_v58 }
  0xe6   :  { %v138_v7 = vsel %vm137_vm14, %v136_v6, 0.0 }
  0xe7   :  { %139 = vadd.xlane.f32.xlu0 %v138_v7 }
 0x15a   :  { %v140_v8 = vpop.xlane.xlu0 %139 }
 0x15b   :  { %v141_v9 = vrot.slane %v140_v8, 4 }
 0x15d   :  { %v142_v10 = vadd.f32 %v141_v9, %v140_v8 }
 0x15f   :  { %v143_v11 = vrot.slane %v142_v10, 2 }
 0x161   :  { %v144_v12 = vadd.f32 %v143_v11, %v142_v10 }
 0x163   :  { %v145_v13 = vrot.slane %v144_v12, 1 }
 0x165   :  { %v146_v14 = vadd.f32 %v145_v13, %v144_v12 }
 0x167   :  { %174 = vpush %v146_v14 }
 0x198   :  { %s175_s20 = spop %174 }
 0x199   :  { %v151_v15 = vstv %s175_s20 }
 0x19a   :  { %v152_v16 = vsel %vm150_vm1, %v151_v15, 0.0 }
 0x19b   :  { %153 = vst [vmem:[#allocation2] sm:$0xff] %v152_v16 }
 0x19c   :  { %164 = dma.vmem_to_hbm [thread:$0]  %s160_s1, 128, %s162_s19, [#allocation3]  }
 0x19d   :  { %208 = dma.done.wait [#allocation3], 128  }
 0x19e   :  { %209 = vsyncadd [#allocation3], 4294967168 }
 0x19f   :  { %169 = vsyncpa [#allocation3], 1 }

</bundles_post_ra>
